<compile_context>
chip_gen: v5e
topology: v5e:2x2
jax: 0.10.0
libtpu: 0.0.40
codegen_flags: <defaults>
</compile_context>

<pallas_src>
import jax
import jax.numpy as jnp
from jax import lax
from jax.experimental import pallas as pl
from jax.experimental.pallas import tpu as pltpu


_LANE = 128  # last-dim tile multiple for sub-full blocks


def _round_up(x, m):
    return ((x + m - 1) // m) * m


def _largest_divisor_tile(dim, preferred, multiple):
    """Largest t <= preferred with t % multiple == 0 and dim % t == 0, or None."""
    t = (min(preferred, dim) // multiple) * multiple
    while t >= multiple:
        if dim % t == 0:
            return t
        t -= multiple
    return None


def _vmem_budget_bytes():
    cap = 64 << 20
    try:
        info = pltpu.get_tpu_info()
        cap = int(getattr(info, "vmem_capacity_bytes", cap)) or cap
    except Exception:
        pass
    # ~25% headroom for compiler-internal scratch / semaphores; cap at 100 MiB
    # on 128-MiB parts (v5e/v6e) -> ~48 MiB usable on v7x's 64 MiB.
    return int(min(cap * 3 // 4, 100 << 20))


def _proj_kernel(x_ref, w_ref, b_ref, o_ref):
    """One (bm, bn) output tile; full-K stripe, single MXU pass (no K split)."""
    acc = lax.dot_general(
        x_ref[...], w_ref[...],
        dimension_numbers=(((1,), (1,)), ((), ())),   # x[., K] . w[., K]^T
        preferred_element_type=jnp.float32)
    o_ref[...] = (acc + b_ref[...].astype(jnp.float32)).astype(o_ref.dtype)


def _proj_kernel_ksplit(x_ref, w_ref, b_ref, o_ref, acc_ref):
    """K-split variant: f32 VMEM accumulator with pl.when init/finalize."""
    k = pl.program_id(2)

    @pl.when(k == 0)
    def _():
        acc_ref[...] = jnp.zeros_like(acc_ref)

    acc_ref[...] += lax.dot_general(
        x_ref[...], w_ref[...],
        dimension_numbers=(((1,), (1,)), ((), ())),
        preferred_element_type=jnp.float32)

    @pl.when(k == pl.num_programs(2) - 1)
    def _():
        o_ref[...] = (acc_ref[...] + b_ref[...].astype(jnp.float32)
                      ).astype(o_ref.dtype)


def projection_forward(x, weight, bias, *,
                       block_m=None, block_n=None, block_k=None):
    """Pallas implementation of Projection.forward: y = x @ weight.T + bias.

    weight: [D_out, D_in] (PyTorch nn.Linear layout), bias: [D_out].
    x: [..., D_in]; leading dims are flattened into the batch dim.
    """
    orig_shape = x.shape
    d_in = orig_shape[-1]
    d_out, d_in_w = weight.shape
    assert d_in_w == d_in, "weight must be [D_out, D_in] (PyTorch Linear layout)"

    x2 = x.reshape(-1, d_in)
    B = x2.shape[0]

    x_item = jnp.dtype(x.dtype).itemsize
    w_item = jnp.dtype(weight.dtype).itemsize
    o_item = x_item
    # dtype-aware sublane multiple for the batch tile (8 f32 / 16 bf16 / 32 i8).
    sublane = {4: 8, 2: 16, 1: 32}.get(x_item, 8)

    budget = _vmem_budget_bytes()

    def fits(bm, bn, bk, with_acc):
        need = 2 * (bm * bk * x_item + bn * bk * w_item + bn * w_item)  # dbl-buffered inputs
        need += 2 * bm * bn * o_item                                    # dbl-buffered output
        if with_acc:
            need += bm * bn * 4
        return need <= budget

    def select_mn(pref_m, pref_n):
        if block_m is not None:
            bm = block_m
        elif B <= pref_m:
            bm = B                       # full-extent block: no batch padding
        else:
            bm = _largest_divisor_tile(B, pref_m, sublane) or pref_m
        if block_n is not None:
            bn = block_n
        elif d_out <= pref_n:
            bn = d_out                   # full-extent block: no output padding
        else:
            bn = (_largest_divisor_tile(d_out, pref_n, 256)    # fill MXU N (v6e/v7x)
                  or _largest_divisor_tile(d_out, pref_n, _LANE)
                  or pref_n)
        return bm, bn

    bm, bn = select_mn(512, 512)

    if block_k is not None:
        bk = min(_round_up(block_k, _LANE), _round_up(d_in, _LANE))
        split_k = bk < d_in
    else:
        bk, split_k = d_in, False
        if not fits(bm, bn, bk, with_acc=False):
            bm, bn = select_mn(256, 256)
            if not fits(bm, bn, bk, with_acc=False):
                split_k = True
                bk = 1024
                while bk > _LANE and not fits(bm, bn, bk, with_acc=True):
                    bk //= 2

    # Keep the parallel grid >= 2 steps so both v7x TensorCores get work.
    if (block_m is None and block_n is None
            and B <= bm and bn == d_out and d_out >= 256 and d_out % 256 == 0):
        bn = d_out // 2

    # --- padded extents (only where a tile does not evenly cover the array) ---
    B_p = _round_up(B, bm)
    d_out_p = _round_up(d_out, bn)
    d_in_p = _round_up(d_in, bk) if split_k else d_in

    def pad2(a, rows, cols):
        if a.shape == (rows, cols):
            return a                     # aligned fast path: no copy
        return jnp.zeros((rows, cols), a.dtype).at[:a.shape[0], :a.shape[1]].set(a)

    xp = pad2(x2, B_p, d_in_p)
    wp = pad2(weight, d_out_p, d_in_p)           # native [D_out, D_in] layout
    bp = pad2(bias.reshape(1, d_out), 1, d_out_p)

    grid_m, grid_n = B_p // bm, d_out_p // bn

    cost = pl.CostEstimate(
        flops=2 * B_p * d_out_p * d_in_p,
        transcendentals=0,
        bytes_accessed=(grid_n * B_p * d_in_p * x_item       # x re-read per N tile
                        + grid_m * d_out_p * d_in_p * w_item  # W re-read per M tile
                        + d_out_p * w_item
                        + B_p * d_out_p * o_item),
    )
    compiler_params = pltpu.CompilerParams(
        dimension_semantics=(("parallel", "parallel", "arbitrary") if split_k
                             else ("parallel", "parallel")),
        vmem_limit_bytes=budget,
    )

    if split_k:
        grid_spec = pltpu.PrefetchScalarGridSpec(
            num_scalar_prefetch=0,
            grid=(grid_m, grid_n, d_in_p // bk),
            in_specs=[
                pl.BlockSpec((bm, bk), lambda i, j, k: (i, k)),   # x tile
                pl.BlockSpec((bn, bk), lambda i, j, k: (j, k)),   # W tile (native layout)
                pl.BlockSpec((1, bn), lambda i, j, k: (0, j)),    # bias tile
            ],
            out_specs=pl.BlockSpec((bm, bn), lambda i, j, k: (i, j)),
            scratch_shapes=[pltpu.VMEM((bm, bn), jnp.float32)],
        )
        kernel = _proj_kernel_ksplit
    else:
        grid_spec = pltpu.PrefetchScalarGridSpec(
            num_scalar_prefetch=0,
            grid=(grid_m, grid_n),
            in_specs=[
                pl.BlockSpec((bm, d_in), lambda i, j: (i, 0)),    # full-K x stripe
                pl.BlockSpec((bn, d_in), lambda i, j: (j, 0)),    # full-K W stripe
                pl.BlockSpec((1, bn), lambda i, j: (0, j)),       # bias tile
            ],
            out_specs=pl.BlockSpec((bm, bn), lambda i, j: (i, j)),
        )
        kernel = _proj_kernel

    out_p = pl.pallas_call(
        kernel,
        out_shape=jax.ShapeDtypeStruct((B_p, d_out_p), x.dtype),
        grid_spec=grid_spec,
        compiler_params=compiler_params,
        cost_estimate=cost,
    )(xp, wp, bp)

    out = out_p if (B_p == B and d_out_p == d_out) else out_p[:B, :d_out]
    return out.reshape(*orig_shape[:-1], d_out)


def reference_forward(x, weight, bias):
    y = jnp.einsum("...i,oi->...o", x.astype(jnp.float32),
                   weight.astype(jnp.float32)) + bias.astype(jnp.float32)
    return y.astype(x.dtype)


if __name__ == "__main__":
    # --- Test 1: small shapes consistent with the module (batch=8, hidden=32).
    B, D = 8, 32
    kx, kw, kb = jax.random.split(jax.random.PRNGKey(0), 3)
    x = jax.random.normal(kx, (B, D), dtype=jnp.float32)
    w = jax.random.normal(kw, (D, D), dtype=jnp.float32) / jnp.sqrt(D)
    b = jax.random.normal(kb, (D,), dtype=jnp.float32) * 0.01
    out = jax.block_until_ready(projection_forward(x, w, b))
    ref = reference_forward(x, w, b)
    assert out.shape == (B, D)
    assert jnp.allclose(out, ref, atol=1e-5, rtol=1e-5)

    # --- Test 2: unaligned shapes + forced small tiles -> exercises padding,
    #     the K-split accumulator path and a multi-step pipelined (M,N,K) grid.
    B2, D2 = 48, 160
    kx2, kw2, kb2 = jax.random.split(jax.random.PRNGKey(1), 3)
    x2 = jax.random.normal(kx2, (B2, D2), dtype=jnp.float32)
    w2 = jax.random.normal(kw2, (D2, D2), dtype=jnp.float32) / jnp.sqrt(D2)
    b2 = jax.random.normal(kb2, (D2,), dtype=jnp.float32) * 0.01
    out2 = jax.block_until_ready(
        projection_forward(x2, w2, b2, block_m=16, block_n=128, block_k=128))
    ref2 = reference_forward(x2, w2, b2)
    assert out2.shape == (B2, D2)
    assert jnp.allclose(out2, ref2, atol=1e-4, rtol=1e-4)

    # --- Test 3: leading batch dims + aligned hidden on the default copy-free,
    #     single-K-pass path; N is auto-split so the parallel grid has 2 steps.
    D3 = 256
    kx3, kw3, kb3 = jax.random.split(jax.random.PRNGKey(2), 3)
    x3 = jax.random.normal(kx3, (2, 16, D3), dtype=jnp.float32)
    w3 = jax.random.normal(kw3, (D3, D3), dtype=jnp.float32) / jnp.sqrt(D3)
    b3 = jax.random.normal(kb3, (D3,), dtype=jnp.float32) * 0.01
    out3 = jax.block_until_ready(projection_forward(x3, w3, b3))
    ref3 = reference_forward(x3, w3, b3)
    assert out3.shape == (2, 16, D3)
    assert jnp.allclose(out3, ref3, atol=1e-3, rtol=1e-3)

    print("KERNEL_OK")
</pallas_src>

<mosaic_0001>
module attributes {stable_mosaic.version = 11 : i64} {
  func.func @_proj_kernel(%arg0: i32, %arg1: i32, %arg2: memref<8x32xf32, #tpu.memory_space<vmem>>, %arg3: memref<32x32xf32, #tpu.memory_space<vmem>>, %arg4: memref<1x32xf32, #tpu.memory_space<vmem>>, %arg5: memref<8x32xf32, #tpu.memory_space<vmem>>) attributes {dimension_semantics = [#tpu.dimension_semantics<parallel>, #tpu.dimension_semantics<parallel>], iteration_bounds = array<i64: 1, 1>, scalar_prefetch = 0 : i64, scratch_operands = 0 : i64, tpu.core_type = #tpu.core_type<tc>, window_params = [{transform_indices = @transform_0, window_bounds = array<i64: 8, 32>}, {transform_indices = @transform_1, window_bounds = array<i64: 32, 32>}, {transform_indices = @transform_2, window_bounds = array<i64: 1, 32>}, {transform_indices = @transform_3, window_bounds = array<i64: 8, 32>}]} {
    %c0 = arith.constant 0 : index
    %c0_0 = arith.constant 0 : index
    %0 = vector.load %arg2[%c0, %c0_0] : memref<8x32xf32, #tpu.memory_space<vmem>>, vector<8x32xf32>
    %c0_1 = arith.constant 0 : index
    %c0_2 = arith.constant 0 : index
    %1 = vector.load %arg3[%c0_1, %c0_2] : memref<32x32xf32, #tpu.memory_space<vmem>>, vector<32x32xf32>
    %cst = arith.constant dense<0.000000e+00> : vector<8x32xf32>
    %2 = tpu.matmul %0, %1, %cst {dimension_numbers = #tpu.dot_dimension_numbers<[1], [1], [0], [0], [0, 0, 1, 0], [], []>} : vector<8x32xf32>, vector<32x32xf32>, vector<8x32xf32> -> vector<8x32xf32>
    %c0_3 = arith.constant 0 : index
    %c0_4 = arith.constant 0 : index
    %3 = vector.load %arg4[%c0_3, %c0_4] : memref<1x32xf32, #tpu.memory_space<vmem>>, vector<1x32xf32>
    %4 = vector.broadcast %3 : vector<1x32xf32> to vector<8x32xf32>
    %5 = arith.addf %2, %4 : vector<8x32xf32>
    %c0_5 = arith.constant 0 : index
    %c0_6 = arith.constant 0 : index
    %6 = vector.load %arg5[%c0_5, %c0_6] : memref<8x32xf32, #tpu.memory_space<vmem>>, vector<8x32xf32>
    tpu.vector_store %arg5[%c0_5, %c0_6], %5 {strides = array<i32>} : memref<8x32xf32, #tpu.memory_space<vmem>>, vector<8x32xf32>,
    return
  }
  func.func @transform_0(%arg0: i32, %arg1: i32) -> (i32, i32) {
    %c0_i32 = arith.constant 0 : i32
    %c0_i32_0 = arith.constant 0 : i32
    return %arg0, %c0_i32 : i32, i32
  }
  func.func @transform_1(%arg0: i32, %arg1: i32) -> (i32, i32) {
    %c0_i32 = arith.constant 0 : i32
    %c0_i32_0 = arith.constant 0 : i32
    return %arg1, %c0_i32 : i32, i32
  }
  func.func @transform_2(%arg0: i32, %arg1: i32) -> (i32, i32) {
    %c0_i32 = arith.constant 0 : i32
    %c0_i32_0 = arith.constant 0 : i32
    return %c0_i32, %arg1 : i32, i32
  }
  func.func @transform_3(%arg0: i32, %arg1: i32) -> (i32, i32) {
    %c0_i32 = arith.constant 0 : i32
    return %arg0, %arg1 : i32, i32
  }
}

</mosaic_0001>

<bundles_post_ra>
// kernel: tpu_custom_call.1
= control target key start
LH: loop header
LB: loop body
LE: loop exit
PB: predicated region body
PF: predicated region fallthrough
CT: control target
= control target key end

     0   :  { %8 = vsyncpa [#allocation3], 0  ;;  %s241_s0 = inlined_call_operand.hbm [shape: f32[8,32], index: 0, kind: input, shape index: {}]   ;;  %s242_s1 = inlined_call_operand.hbm [shape: f32[32,32], index: 1, kind: input, shape index: {}]   ;;  %s243_s2 = inlined_call_operand.vmem [shape: f32[1,32], index: 2, kind: input, shape index: {}]   ;;  %s244_s3 = inlined_call_operand.hbm [shape: f32[8,32], index: 3, kind: output, shape index: {}]  }
   0x1   :  { %9 = vsyncpa [#allocation6], 0 }
   0x2   :  { %10 = vsyncpa [#allocation4], 0  ;;  %s16_s14 = sshll.u32 %s241_s0, 4  ;;  %s198_s15 = smov [#allocation2]   ;;  %s17_s14 = int_to_ptr.hbm [resolvable:$true] %s16_s14 }
   0x3   :  { %s18_s16 = sshll.u32 %s198_s15, 4  ;;  %s26_s19 = sshll.u32 %s242_s1, 4  ;;  %s19_s16 = int_to_ptr.vmem [resolvable:$true] %s18_s16  ;;  %s27_s19 = int_to_ptr.hbm [resolvable:$true] %s26_s19 }
   0x4   :  { %21 = dma.hbm_to_vmem [thread:$0]  %s17_s14, 128, %s19_s16, [#allocation3]  }
   0x5   :  { %s199_s20 = smov [#allocation5]   ;;  %s200_s22 = smov 128  }
   0x6   :  { %s28_s21 = sshll.u32 %s199_s20, 4  ;;  %s201_s23 = smov 8   ;;  %s29_s21 = int_to_ptr.vmem [resolvable:$true] %s28_s21 }
   0x7   :  { %34 = dma.hbm_to_vmem [thread:$0]  %s27_s19, 512, %s29_s21, [#allocation6], %s200_s22, %s200_s22, %s201_s23  }
   0x8   :  { %192 = dma.done.wait [#allocation3], 128  }
   0x9   :  { %193 = vsyncadd [#allocation3], 4294967168 }
   0xa   :  { %194 = dma.done.wait [#allocation6], 512  }
   0xb   :  { %195 = vsyncadd [#allocation6], 4294966784  ;;  %vm54_vm0 = vcmask 261120   ;;  %v49_v0 = vld [vmem:[#allocation5 + $0x18] sm:$0xff]  ;;  %v48_v1 = vld [vmem:[#allocation5 + $0x10] sm:$0xff]  ;;  %s202_s24 = smov [#allocation7]  }
   0xc   :  { %109 = vmatpush.xpose.msk.msra.mxu0 %vm54_vm0, %v49_v0  ;;  %v47_v2 = vld [vmem:[#allocation5 + $0x8] sm:$0xff]  ;;  %v46_v3 = vld [vmem:[#allocation5] sm:$0xff]  ;;  %v45_v4 = vld [vmem:[#allocation2] sm:$0xff]  ;;  %s96_s25 = sshll.u32 %s202_s24, 4  ;;  %s98_s28 = sshll.u32 %s244_s3, 4  ;;  %s97_s25 = int_to_ptr.vmem [resolvable:$true] %s96_s25  ;;  %s99_s28 = int_to_ptr.hbm [resolvable:$true] %s98_s28 }
   0xd   :  { %v119_v5 = vld [vmem:[%s243_s2] ss:$0 sm:$0xff] }
  0x10   :  { %110 = vmatpush.xpose.msk.msra.mxu0 %vm54_vm0, %v48_v1 }
  0x14   :  { %111 = vmatpush.xpose.msk.msra.mxu0 %vm54_vm0, %v47_v2 }
  0x18   :  { %112 = vmatpush.xpose.msk.msra.mxu0 %vm54_vm0, %v46_v3 }
  0x1b   :  { %113 = vmatmul.msk.f32.vlgmr.msra.gmra.mxu0 %vm54_vm0, %v45_v4 }
  0x98   :  { %v87_v6 = vpop.f32.mrf.mxu0 }
  0x99   :  { %v88_v7 = vadd.f32 %v119_v5, %v87_v6 }
  0x9b   :  { %90 = vst.msk [vmem:[#allocation7] sm:$0xff] %vm54_vm0, %v88_v7 }
  0x9c   :  { %101 = dma.vmem_to_hbm [thread:$0]  %s97_s25, 128, %s99_s28, [#allocation4]  }
  0x9d   :  { %196 = dma.done.wait [#allocation4], 128  }
  0x9e   :  { %197 = vsyncadd [#allocation4], 4294967168 }
  0x9f   :  { %106 = vsyncpa [#allocation3], 1 }
  0xa0   :  { %107 = vsyncpa [#allocation6], 1 }
  0xa1   :  { %108 = vsyncpa [#allocation4], 1 }

</bundles_post_ra>
